<compile_context>
chip_gen: v6e
topology: v6e:2x2x1
jax: 0.10.0
libtpu: 0.0.40
codegen_flags: <defaults>
</compile_context>

<pallas_src>
import jax
import jax.numpy as jnp
from jax.experimental import pallas as pl
from jax.experimental.pallas import tpu as pltpu

PAD = 128          # lane-padded width for every layer
NUM_LAYERS = 5     # original module layer count
NUM_FUSED = 3      # [L1∘L2] -> ReLU -> [L3∘L4] -> ReLU -> [L5] -> sigmoid


def _mlp_kernel(x_ref, wp_ref, bp_ref, o_ref):
    """x_ref: (TILE_B, 128) bf16; wp_ref: (3,128,128) bf16; bp_ref: (3,1,128) f32."""
    h = x_ref[...]                                    # bf16 activations

    def linear(h_bf16, layer):
        acc = jnp.dot(h_bf16, wp_ref[layer],
                      preferred_element_type=jnp.float32)
        return acc + bp_ref[layer]                    # (TILE_B,128) f32 + (1,128) f32

    h = linear(h, 0)                                  # linear1 ∘ linear2 (fused)
    h = jnp.maximum(h, 0.0)                           # relu
    h = linear(h.astype(jnp.bfloat16), 1)             # linear3 ∘ linear4 (fused)
    h = jnp.maximum(h, 0.0)                           # relu
    h = linear(h.astype(jnp.bfloat16), 2)             # linear5
    o_ref[...] = jax.nn.sigmoid(h).astype(o_ref.dtype)


def _round_up(n, m):
    return ((n + m - 1) // m) * m


def pack_params(params):
    """params: list of 5 (W (in,out) f32, b (out,) f32) pairs (PyTorch weight.T layout).

    Returns (wp bf16 (3,128,128), bp f32 (3,1,128)) with adjacent bias-free
    linear pairs pre-composed in f32 and every dim zero-padded to 128.
    """
    assert len(params) == NUM_LAYERS
    (w1, b1), (w2, b2), (w3, b3), (w4, b4), (w5, b5) = params

    fused = [
        (w1 @ w2, b1 @ w2 + b2),   # linear1 then linear2 (no nonlinearity between)
        (w3 @ w4, b3 @ w4 + b4),   # linear3 then linear4 (no nonlinearity between)
        (w5, b5),                  # linear5
    ]

    wp = jnp.zeros((NUM_FUSED, PAD, PAD), jnp.float32)
    bp = jnp.zeros((NUM_FUSED, 1, PAD), jnp.float32)
    for i, (w, b) in enumerate(fused):
        fi, fo = w.shape
        assert fi <= PAD and fo <= PAD
        wp = wp.at[i, :fi, :fo].set(w)
        bp = bp.at[i, 0, :fo].set(b.reshape(-1))
    return wp.astype(jnp.bfloat16), bp


def mlp_forward(x, wp, bp, out_dim, *, tile_b=512):
    """x: (batch, input_dim) f32; wp/bp: packed params from pack_params."""
    batch, in_dim = x.shape
    assert in_dim <= PAD, "input_dim must be <= 128 for this packing"

    # choose a batch tile: large for pipelining, clamped for tiny batches
    tile_b = min(tile_b, _round_up(batch, 8))
    b_pad = _round_up(batch, tile_b)

    # lane-pad (and batch-pad) x; cast matmul operand to bf16 in the wrapper
    x_p = jnp.zeros((b_pad, PAD), jnp.bfloat16)
    x_p = x_p.at[:batch, :in_dim].set(x.astype(jnp.bfloat16))

    grid = (b_pad // tile_b,)
    out = pl.pallas_call(
        _mlp_kernel,
        out_shape=jax.ShapeDtypeStruct((b_pad, PAD), jnp.float32),
        grid_spec=pltpu.PrefetchScalarGridSpec(
            num_scalar_prefetch=0,
            grid=grid,
            in_specs=[
                pl.BlockSpec((tile_b, PAD), lambda i: (i, 0)),               # x tile
                pl.BlockSpec((NUM_FUSED, PAD, PAD), lambda i: (0, 0, 0)),    # weights (VMEM-resident)
                pl.BlockSpec((NUM_FUSED, 1, PAD), lambda i: (0, 0, 0)),      # biases  (VMEM-resident)
            ],
            out_specs=pl.BlockSpec((tile_b, PAD), lambda i: (i, 0)),
        ),
        compiler_params=pltpu.CompilerParams(
            dimension_semantics=("parallel",)),
    )(x_p, wp, bp)

    # drop batch padding and the sigmoid(0)=0.5 padded lanes
    return out[:batch, :out_dim]


def init_params(key, input_dim, output_dim):
    """Deterministic init mimicking PyTorch's default U(-1/sqrt(fan_in), ...)."""
    dims = [input_dim, 64, 32, 16, 8, output_dim]
    params = []
    for i in range(NUM_LAYERS):
        fan_in, fan_out = dims[i], dims[i + 1]
        key, kw, kb = jax.random.split(key, 3)
        bound = 1.0 / jnp.sqrt(fan_in)
        # stored as (in, out) == PyTorch weight.T so the kernel does x @ W
        w = jax.random.uniform(kw, (fan_in, fan_out), jnp.float32, -bound, bound)
        b = jax.random.uniform(kb, (fan_out,), jnp.float32, -bound, bound)
        params.append((w, b))
    return params


def reference_forward(x, params):
    """Pure f32, un-fused reference matching the PyTorch module semantics."""
    h = x
    for i, (w, b) in enumerate(params):
        h = h @ w + b
        if i in (1, 3):          # relu after linear2 and linear4
            h = jnp.maximum(h, 0.0)
    return jax.nn.sigmoid(h)


if __name__ == "__main__":
    INPUT_DIM = 64    # sklearn digits: 8x8 = 64 features
    OUTPUT_DIM = 10   # 10 digit classes
    BATCH = 8

    key = jax.random.PRNGKey(0)
    key, kx = jax.random.split(key)
    x = jax.random.normal(kx, (BATCH, INPUT_DIM), dtype=jnp.float32)
    params = init_params(key, INPUT_DIM, OUTPUT_DIM)

    wp, bp = pack_params(params)
    out = mlp_forward(x, wp, bp, OUTPUT_DIM)
    out = jax.block_until_ready(out)

    ref = reference_forward(x, params)
    assert out.shape == (BATCH, OUTPUT_DIM)
    # kernel uses bf16 MXU operands with f32 accumulation -> loose tolerance
    assert jnp.allclose(out, ref, atol=2e-2, rtol=0.0), float(jnp.max(jnp.abs(out - ref)))

    print("KERNEL_OK")
</pallas_src>

<mosaic_0001>
module attributes {stable_mosaic.version = 11 : i64} {
  func.func @_mlp_kernel(%arg0: i32, %arg1: memref<8x128xbf16, #tpu.memory_space<vmem>>, %arg2: memref<3x128x128xbf16, #tpu.memory_space<vmem>>, %arg3: memref<3x1x128xf32, #tpu.memory_space<vmem>>, %arg4: memref<8x128xf32, #tpu.memory_space<vmem>>) attributes {dimension_semantics = [#tpu.dimension_semantics<parallel>], iteration_bounds = array<i64: 1>, scalar_prefetch = 0 : i64, scratch_operands = 0 : i64, tpu.core_type = #tpu.core_type<tc>, window_params = [{transform_indices = @transform_0, window_bounds = array<i64: 8, 128>}, {pipeline_mode = #tpu.pipeline_mode<synchronous>, transform_indices = @transform_1, window_bounds = array<i64: 3, 128, 128>}, {pipeline_mode = #tpu.pipeline_mode<synchronous>, transform_indices = @transform_2, window_bounds = array<i64: 3, 1, 128>}, {transform_indices = @transform_3, window_bounds = array<i64: 8, 128>}]} {
    %c0 = arith.constant 0 : index
    %c0_0 = arith.constant 0 : index
    %0 = vector.load %arg1[%c0, %c0_0] : memref<8x128xbf16, #tpu.memory_space<vmem>>, vector<8x128xbf16>
    %c0_1 = arith.constant 0 : index
    %c0_2 = arith.constant 0 : index
    %c0_3 = arith.constant 0 : index
    %1 = vector.load %arg2[%c0_1, %c0_2, %c0_3] : memref<3x128x128xbf16, #tpu.memory_space<vmem>>, vector<1x128x128xbf16>
    %2 = vector.shape_cast %1 : vector<1x128x128xbf16> to vector<128x128xbf16>
    %cst = arith.constant dense<0.000000e+00> : vector<8x128xf32>
    %3 = tpu.matmul %0, %2, %cst {dimension_numbers = #tpu.dot_dimension_numbers<[1], [0], [0], [1], [0, 0, 1, 1], [], []>} : vector<8x128xbf16>, vector<128x128xbf16>, vector<8x128xf32> -> vector<8x128xf32>
    %c0_4 = arith.constant 0 : index
    %c0_5 = arith.constant 0 : index
    %c0_6 = arith.constant 0 : index
    %4 = vector.load %arg3[%c0_4, %c0_5, %c0_6] : memref<3x1x128xf32, #tpu.memory_space<vmem>>, vector<1x1x128xf32>
    %5 = vector.shape_cast %4 : vector<1x1x128xf32> to vector<1x128xf32>
    %6 = vector.broadcast %5 : vector<1x128xf32> to vector<8x128xf32>
    %7 = arith.addf %3, %6 : vector<8x128xf32>
    %cst_7 = arith.constant 0.000000e+00 : f32
    %8 = vector.broadcast %cst_7 : f32 to vector<8x128xf32>
    %9 = arith.maximumf %7, %8 : vector<8x128xf32>
    %10 = arith.truncf %9 : vector<8x128xf32> to vector<8x128xbf16>
    %c1 = arith.constant 1 : index
    %c0_8 = arith.constant 0 : index
    %c0_9 = arith.constant 0 : index
    %11 = vector.load %arg2[%c1, %c0_8, %c0_9] : memref<3x128x128xbf16, #tpu.memory_space<vmem>>, vector<1x128x128xbf16>
    %12 = vector.shape_cast %11 : vector<1x128x128xbf16> to vector<128x128xbf16>
    %cst_10 = arith.constant dense<0.000000e+00> : vector<8x128xf32>
    %13 = tpu.matmul %10, %12, %cst_10 {dimension_numbers = #tpu.dot_dimension_numbers<[1], [0], [0], [1], [0, 0, 1, 1], [], []>} : vector<8x128xbf16>, vector<128x128xbf16>, vector<8x128xf32> -> vector<8x128xf32>
    %c1_11 = arith.constant 1 : index
    %c0_12 = arith.constant 0 : index
    %c0_13 = arith.constant 0 : index
    %14 = vector.load %arg3[%c1_11, %c0_12, %c0_13] : memref<3x1x128xf32, #tpu.memory_space<vmem>>, vector<1x1x128xf32>
    %15 = vector.shape_cast %14 : vector<1x1x128xf32> to vector<1x128xf32>
    %16 = vector.broadcast %15 : vector<1x128xf32> to vector<8x128xf32>
    %17 = arith.addf %13, %16 : vector<8x128xf32>
    %cst_14 = arith.constant 0.000000e+00 : f32
    %18 = vector.broadcast %cst_14 : f32 to vector<8x128xf32>
    %19 = arith.maximumf %17, %18 : vector<8x128xf32>
    %20 = arith.truncf %19 : vector<8x128xf32> to vector<8x128xbf16>
    %c2 = arith.constant 2 : index
    %c0_15 = arith.constant 0 : index
    %c0_16 = arith.constant 0 : index
    %21 = vector.load %arg2[%c2, %c0_15, %c0_16] : memref<3x128x128xbf16, #tpu.memory_space<vmem>>, vector<1x128x128xbf16>
    %22 = vector.shape_cast %21 : vector<1x128x128xbf16> to vector<128x128xbf16>
    %cst_17 = arith.constant dense<0.000000e+00> : vector<8x128xf32>
    %23 = tpu.matmul %20, %22, %cst_17 {dimension_numbers = #tpu.dot_dimension_numbers<[1], [0], [0], [1], [0, 0, 1, 1], [], []>} : vector<8x128xbf16>, vector<128x128xbf16>, vector<8x128xf32> -> vector<8x128xf32>
    %c2_18 = arith.constant 2 : index
    %c0_19 = arith.constant 0 : index
    %c0_20 = arith.constant 0 : index
    %24 = vector.load %arg3[%c2_18, %c0_19, %c0_20] : memref<3x1x128xf32, #tpu.memory_space<vmem>>, vector<1x1x128xf32>
    %25 = vector.shape_cast %24 : vector<1x1x128xf32> to vector<1x128xf32>
    %26 = vector.broadcast %25 : vector<1x128xf32> to vector<8x128xf32>
    %27 = arith.addf %23, %26 : vector<8x128xf32>
    %28 = arith.negf %27 : vector<8x128xf32>
    %29 = math.exp %28 : vector<8x128xf32>
    %cst_21 = arith.constant 1.000000e+00 : f32
    %30 = vector.broadcast %cst_21 : f32 to vector<8x128xf32>
    %31 = arith.addf %30, %29 : vector<8x128xf32>
    %32 = arith.divf %30, %31 : vector<8x128xf32>
    %c0_22 = arith.constant 0 : index
    %c0_23 = arith.constant 0 : index
    %33 = vector.load %arg4[%c0_22, %c0_23] : memref<8x128xf32, #tpu.memory_space<vmem>>, vector<8x128xf32>
    tpu.vector_store %arg4[%c0_22, %c0_23], %32 {strides = array<i32>} : memref<8x128xf32, #tpu.memory_space<vmem>>, vector<8x128xf32>,
    return
  }
  func.func @transform_0(%arg0: i32) -> (i32, i32) {
    %c0_i32 = arith.constant 0 : i32
    %c0_i32_0 = arith.constant 0 : i32
    return %arg0, %c0_i32 : i32, i32
  }
  func.func @transform_1(%arg0: i32) -> (i32, i32, i32) {
    %c0_i32 = arith.constant 0 : i32
    %c0_i32_0 = arith.constant 0 : i32
    %c0_i32_1 = arith.constant 0 : i32
    %c0_i32_2 = arith.constant 0 : i32
    return %c0_i32, %c0_i32_0, %c0_i32_1 : i32, i32, i32
  }
  func.func @transform_2(%arg0: i32) -> (i32, i32, i32) {
    %c0_i32 = arith.constant 0 : i32
    %c0_i32_0 = arith.constant 0 : i32
    %c0_i32_1 = arith.constant 0 : i32
    %c0_i32_2 = arith.constant 0 : i32
    return %c0_i32, %c0_i32_0, %c0_i32_1 : i32, i32, i32
  }
  func.func @transform_3(%arg0: i32) -> (i32, i32) {
    %c0_i32 = arith.constant 0 : i32
    %c0_i32_0 = arith.constant 0 : i32
    return %arg0, %c0_i32 : i32, i32
  }
}

</mosaic_0001>

<bundles_post_ra>
// kernel: tpu_custom_call.1
= control target key start
LH: loop header
LB: loop body
LE: loop exit
PB: predicated region body
PF: predicated region fallthrough
CT: control target
= control target key end

     0   :  { %8 = vsyncpa [#allocation3], 0  ;;  %s700_s0 = inlined_call_operand.hbm [shape: bf16[8,128], index: 0, kind: input, shape index: {}]   ;;  %s701_s1 = inlined_call_operand.hbm [shape: bf16[3,128,128], index: 1, kind: input, shape index: {}]   ;;  %s702_s2 = inlined_call_operand.vmem [shape: f32[3,1,128], index: 2, kind: input, shape index: {}]   ;;  %s703_s3 = inlined_call_operand.hbm [shape: f32[8,128], index: 3, kind: output, shape index: {}]  }
   0x1   :  { %9 = vsyncpa [#allocation6], 0 }
   0x2   :  { %10 = vsyncpa [#allocation4], 0  ;;  %s625_s12 = smov [#allocation2]   ;;  %s626_s14 = smov [#allocation5]  }
   0x3   :  { %s17_s13 = sshll.u32 %s625_s12, 4  ;;  %s26_s15 = sshll.u32 %s626_s14, 4  ;;  %s18_s13 = int_to_ptr.vmem [resolvable:$true] %s17_s13  ;;  %s27_s15 = int_to_ptr.vmem [resolvable:$true] %s26_s15 }
   0x4   :  { %s567_s16 = scalar_lea.vmem %s18_s13, 64  ;;  %p572_p1 = scmp.lt.s32.totalorder %s18_s13, %s18_s13 }
   0x5   :  { %p568_p0 = scmp.ne.s32.totalorder %s18_s13, %s567_s16  ;;  %p573_p2 = scmp.lt.s32.totalorder %s567_s16, %s567_s16 }
   0x7   :  { %p574_p3 = por %p573_p2, %p572_p1 }
   0x9   :  { %p575_p4 = pnand %p574_p3, %p568_p0 }
   0xb   :  { %578 = shalt.err (!%p575_p4)
}
   0xc   :  { %20 = dma.hbm_to_vmem [thread:$0]  %s700_s0, 64, %s18_s13, [#allocation3]  }
   0xd   :  { %s587_s19 = scalar_lea.vmem %s27_s15, 3072  ;;  %p592_p6 = scmp.lt.s32.totalorder %s27_s15, %s27_s15 }
   0xe   :  { %p588_p5 = scmp.ne.s32.totalorder %s27_s15, %s587_s19  ;;  %p593_p7 = scmp.lt.s32.totalorder %s587_s19, %s587_s19 }
  0x10   :  { %p594_p8 = por %p593_p7, %p592_p6 }
  0x12   :  { %p595_p9 = pnand %p594_p8, %p588_p5 }
  0x14   :  { %598 = shalt.err (!%p595_p9)
}
  0x15   :  { %s627_s20 = smov 64   ;;  %s628_s21 = smov 4  }
  0x16   :  { %32 = dma.hbm_to_vmem [thread:$0]  %s701_s1, 3072, %s27_s15, [#allocation6], %s627_s20, %s627_s20, %s628_s21  }
  0x17   :  { %619 = dma.done.wait [#allocation3], 64  }
  0x18   :  { %620 = vsyncadd [#allocation3], 4294967232 }
  0x19   :  { %621 = dma.done.wait [#allocation6], 3072  }
  0x1a   :  { %622 = vsyncadd [#allocation6], 4294964224  ;;  %v629_v0 = vmov 0.0   ;;  %vm630_vm0 = vmmov 0   ;;  %v531_v1 = vld [vmem:[#allocation5 + $0x38] sm:$0xff]   ;;  %v532_v2 = vld [vmem:[#allocation5 + $0x30] sm:$0xff]  }
  0x1b   :  { %464 = vmatprep.subr.bf16.mxu0 %v629_v0  ;;  %480 = vmatprep.mubr.msk.bf16.mxu0 %vm630_vm0, %v629_v0  ;;  %v533_v3 = vld [vmem:[#allocation5 + $0x28] sm:$0xff]   ;;  %v539_v4 = vld [vmem:[#allocation5 + $0x78] sm:$0xff]   ;;  %v534_v5 = vld [vmem:[#allocation5 + $0x20] sm:$0xff]   ;;  %s631_s28 = smov [#allocation7]  }
  0x1c   :  { %484 = vmatprep.subr.bf16.mxu1 %v629_v0  ;;  %500 = vmatprep.mubr.msk.bf16.mxu1 %vm630_vm0, %v629_v0  ;;  %v540_v6 = vld [vmem:[#allocation5 + $0x70] sm:$0xff]   ;;  %v535_v7 = vld [vmem:[#allocation5 + $0x18] sm:$0xff]   ;;  %v541_v8 = vld [vmem:[#allocation5 + $0x68] sm:$0xff]   ;;  %s397_s29 = sshll.u32 %s631_s28, 4  ;;  %s398_s29 = int_to_ptr.vmem [resolvable:$true] %s397_s29 }
  0x1d   :  { %465 = vmatpush3.bf16.msra.mxu0 %v531_v1  ;;  %485 = vmatpush3.bf16.msra.mxu1 %v539_v4  ;;  %v536_v9 = vld [vmem:[#allocation5 + $0x10] sm:$0xff]   ;;  %v542_v10 = vld [vmem:[#allocation5 + $0x60] sm:$0xff]   ;;  %v537_v11 = vld [vmem:[#allocation5 + $0x8] sm:$0xff]   ;;  %s599_s30 = scalar_lea.vmem %s398_s29, 128  ;;  %p604_p11 = scmp.lt.s32.totalorder %s398_s29, %s398_s29 }
  0x1e   :  { %466 = vmatprep.subr.bf16.mxu0 %v629_v0  ;;  %486 = vmatprep.subr.bf16.mxu1 %v629_v0  ;;  %v543_v12 = vld [vmem:[#allocation5 + $0x58] sm:$0xff]   ;;  %v538_v13 = vld [vmem:[#allocation5] sm:$0xff]   ;;  %v544_v14 = vld [vmem:[#allocation5 + $0x50] sm:$0xff]   ;;  %p600_p10 = scmp.ne.s32.totalorder %s398_s29, %s599_s30  ;;  %p605_p12 = scmp.lt.s32.totalorder %s599_s30, %s599_s30 }
  0x1f   :  { %v42_v15 = vld [vmem:[#allocation2] sm:$0xf]  ;;  %v545_v16 = vld [vmem:[#allocation5 + $0x48] sm:$0xff]   ;;  %v546_v17 = vld [vmem:[#allocation5 + $0x40] sm:$0xff]  }
  0x20   :  { %v547_v18 = vld [vmem:[#allocation5 + $0xb8] sm:$0xff]   ;;  %v548_v19 = vld [vmem:[#allocation5 + $0xb0] sm:$0xff]   ;;  %v549_v20 = vld [vmem:[#allocation5 + $0xa8] sm:$0xff]   ;;  %p606_p13 = por %p605_p12, %p604_p11 }
  0x21   :  { %467 = vmatpush3.bf16.msra.mxu0 %v532_v2  ;;  %487 = vmatpush3.bf16.msra.mxu1 %v540_v6  ;;  %v550_v21 = vld [vmem:[#allocation5 + $0xa0] sm:$0xff]   ;;  %v551_v22 = vld [vmem:[#allocation5 + $0x98] sm:$0xff]   ;;  %v552_v23 = vld [vmem:[#allocation5 + $0x90] sm:$0xff]  }
  0x22   :  { %468 = vmatprep.subr.bf16.mxu0 %v629_v0  ;;  %488 = vmatprep.subr.bf16.mxu1 %v629_v0  ;;  %v407_v24 = vld [vmem:[%s702_s2] ss:$0 sm:$0xff]  ;;  %v553_v32 = vld [vmem:[#allocation5 + $0x88] sm:$0xff]   ;;  %v554_v33 = vld [vmem:[#allocation5 + $0x80] sm:$0xff]   ;;  %p607_p0 = pnand %p606_p13, %p600_p10 }
  0x23   :  { %v417_v34 = vld [vmem:[%s702_s2 + $0x1] ss:$0 sm:$0xff]  ;;  %v427_v42 = vld [vmem:[%s702_s2 + $0x2] ss:$0 sm:$0xff] }
  0x25   :  { %469 = vmatpush3.bf16.msra.mxu0 %v533_v3  ;;  %489 = vmatpush3.bf16.msra.mxu1 %v541_v8 }
  0x26   :  { %470 = vmatprep.subr.bf16.mxu0 %v629_v0  ;;  %490 = vmatprep.subr.bf16.mxu1 %v629_v0 }
  0x29   :  { %471 = vmatpush3.bf16.msra.mxu0 %v534_v5  ;;  %491 = vmatpush3.bf16.msra.mxu1 %v542_v10 }
  0x2a   :  { %472 = vmatprep.subr.bf16.mxu0 %v629_v0  ;;  %492 = vmatprep.subr.bf16.mxu1 %v629_v0 }
  0x2d   :  { %473 = vmatpush3.bf16.msra.mxu0 %v535_v7  ;;  %493 = vmatpush3.bf16.msra.mxu1 %v543_v12 }
  0x2e   :  { %474 = vmatprep.subr.bf16.mxu0 %v629_v0  ;;  %494 = vmatprep.subr.bf16.mxu1 %v629_v0 }
  0x31   :  { %475 = vmatpush3.bf16.msra.mxu0 %v536_v9  ;;  %495 = vmatpush3.bf16.msra.mxu1 %v544_v14 }
  0x32   :  { %476 = vmatprep.subr.bf16.mxu0 %v629_v0  ;;  %496 = vmatprep.subr.bf16.mxu1 %v629_v0 }
  0x35   :  { %477 = vmatpush3.bf16.msra.mxu0 %v537_v11  ;;  %497 = vmatpush3.bf16.msra.mxu1 %v545_v16 }
  0x36   :  { %478 = vmatprep.subr.bf16.mxu0 %v629_v0  ;;  %498 = vmatprep.subr.bf16.mxu1 %v629_v0 }
  0x39   :  { %479 = vmatpush3.bf16.msra.mxu0 %v538_v13  ;;  %499 = vmatpush3.bf16.msra.mxu1 %v546_v17 }
  0x3a   :  { %504 = vmatprep.subr.bf16.mxu0 %v629_v0 }
  0x3c   :  { %481 = vmatmul.mubr.bf16.vlgmr.msra.gmra.mxu0 %v42_v15 }
  0x3d   :  { %520 = vmatprep.mubr.msk.bf16.mxu0 %vm630_vm0, %v629_v0  ;;  %505 = vmatpush3.bf16.msra.mxu0 %v547_v18 }
  0x3e   :  { %506 = vmatprep.subr.bf16.mxu0 %v629_v0 }
  0x41   :  { %507 = vmatpush3.bf16.msra.mxu0 %v548_v19 }
  0x42   :  { %508 = vmatprep.subr.bf16.mxu0 %v629_v0 }
  0x45   :  { %509 = vmatpush3.bf16.msra.mxu0 %v549_v20 }
  0x46   :  { %510 = vmatprep.subr.bf16.mxu0 %v629_v0 }
  0x49   :  { %511 = vmatpush3.bf16.msra.mxu0 %v550_v21 }
  0x4a   :  { %512 = vmatprep.subr.bf16.mxu0 %v629_v0 }
  0x4d   :  { %513 = vmatpush3.bf16.msra.mxu0 %v551_v22 }
  0x4e   :  { %514 = vmatprep.subr.bf16.mxu0 %v629_v0 }
  0x51   :  { %515 = vmatpush3.bf16.msra.mxu0 %v552_v23 }
  0x52   :  { %516 = vmatprep.subr.bf16.mxu0 %v629_v0 }
  0x55   :  { %517 = vmatpush3.bf16.msra.mxu0 %v553_v32 }
  0x56   :  { %518 = vmatprep.subr.bf16.mxu0 %v629_v0 }
  0x59   :  { %519 = vmatpush3.bf16.msra.mxu0 %v554_v33 }
  0xfc   :  { %v148_v25 = vpop.f32.mrf.mxu0 }
  0xfd   :  { %v149_v26 = vadd.f32 %v407_v24, %v148_v25 }
  0xfe   :  { %v482_v27 = vpop.f32.mrf.mxu0 }
  0xff   :  { %v154_v28 = vmax.f32 %v149_v26, 0.0 }
 0x100   :  { %v151_v29 = vpop.f32.mrf.mxu0 }
 0x101   :  { %v155_v30 = vpack.c.bf16 %v154_v28, %v154_v28 }
 0x102   :  { %v483_v31 = vpop.f32.mrf.mxu0 }
 0x103   :  { %501 = vmatmul.mubr.bf16.vlgmr.msra.gmra.mxu1 %v155_v30 }
 0x1c3   :  { %v263_v35 = vpop.f32.mrf.mxu1 }
 0x1c4   :  { %v264_v36 = vadd.f32 %v417_v34, %v263_v35 }
 0x1c5   :  { %v502_v37 = vpop.f32.mrf.mxu1 }
 0x1c6   :  { %v269_v38 = vmax.f32 %v264_v36, 0.0 }
 0x1c7   :  { %v266_v39 = vpop.f32.mrf.mxu1 }
 0x1c8   :  { %v270_v40 = vpack.c.bf16 %v269_v38, %v269_v38 }
 0x1c9   :  { %v503_v41 = vpop.f32.mrf.mxu1 }
 0x1ca   :  { %521 = vmatmul.mubr.bf16.vlgmr.msra.gmra.mxu0 %v270_v40 }
 0x28a   :  { %v378_v43 = vpop.f32.mrf.mxu0 }
 0x28b   :  { %v379_v44 = vadd.f32 %v427_v42, %v378_v43 }
 0x28c   :  { %v522_v45 = vpop.f32.mrf.mxu0 }
 0x28d   :  { %v436_v46 = vmul.f32 -1.442695, %v379_v44 }
 0x28e   :  { %v381_v47 = vpop.f32.mrf.mxu0 }
 0x28f   :  { %555 = vpow2.f32 %v436_v46 }
 0x290   :  { %v523_v48 = vpop.f32.mrf.mxu0 }
 0x29c   :  { %v556_v49 = vpop.eup %555 }
 0x29d   :  { %v387_v50 = vadd.f32 1.0, %v556_v49 }
 0x29f   :  { %557 = vrcp.f32 %v387_v50 }
 0x2ac   :  { %v558_v51 = vpop.eup %557 }
 0x2ad   :  { %390 = vst [vmem:[#allocation7] sm:$0xff] %v558_v51 }
 0x2ae   :  { %610 = shalt.err (!%p607_p0)
}
 0x2af   :  { %400 = dma.vmem_to_hbm [thread:$0]  %s398_s29, 128, %s703_s3, [#allocation4]  }
 0x2b0   :  { %623 = dma.done.wait [#allocation4], 128  }
 0x2b1   :  { %624 = vsyncadd [#allocation4], 4294967168 }
 0x2b2   :  { %404 = vsyncpa [#allocation3], 1 }
 0x2b3   :  { %405 = vsyncpa [#allocation6], 1 }
 0x2b4   :  { %406 = vsyncpa [#allocation4], 1 }

</bundles_post_ra>
